<compile_context>
chip_gen: v6e
topology: v6e:2x2x1
jax: 0.10.0
libtpu: 0.0.40
codegen_flags: <defaults>
</compile_context>

<pallas_src>
import jax
import jax.numpy as jnp
from jax.experimental import pallas as pl
from jax.experimental.pallas import tpu as pltpu


def _round_up(x, m):
    return (x + m - 1) // m * m


def _pad_lane(d):
    # Lane-dense: multiple of 128.  Odd multiples >= 256 are bumped to a
    # multiple of 256 so the 2x256x256 MXUs on v6e/v7x stay full (no-op for
    # power-of-two model dims, harmless on v5e's 128-wide MXU).
    p = _round_up(d, 128)
    if p >= 256 and p % 256 != 0:
        p = _round_up(d, 256)
    return p


def _vmem_capacity_bytes():
    # Generation-aware VMEM: 128 MiB/TC on v5e/v6e, 64 MiB/TC on v7x.
    try:
        return int(pltpu.get_tpu_info().vmem_capacity_bytes)
    except Exception:
        return 64 << 20  # conservative fallback (v7x per-TC size)


# ------------------------------- kernels ------------------------------------

def ffn_kernel(x_ref, w1_ref, b1_ref, w2_ref, b2_ref, o_ref):
    # Resident-weights fast path: both matmuls in one shot.
    # x is cast to bf16 in-kernel (VPU work that co-issues under the MXU slot)
    # so the wrapper never does a separate HBM round trip on x.
    xb = x_ref[...].astype(jnp.bfloat16)
    h = jnp.dot(xb, w1_ref[...], preferred_element_type=jnp.float32)
    h = jnp.maximum(h + b1_ref[...], 0.0)      # bias + ReLU on the f32 accumulator
    # TODO(synk): keep h in f32 (non-MXU second dot) only if strict f32 parity
    # with the PyTorch reference is required; bf16 h is the throughput choice.
    y = jnp.dot(h.astype(jnp.bfloat16), w2_ref[...],
                preferred_element_type=jnp.float32)
    o_ref[...] = (y + b2_ref[...]).astype(o_ref.dtype)


def ffn_kernel_htiled(x_ref, w1_ref, b1_ref, w2_ref, b2_ref, o_ref, acc_ref):
    # Hidden-axis-tiled path (large hidden, e.g. v7x's 64 MiB VMEM/TC):
    # grid = (M tiles, hidden tiles); W1 is blocked along its columns, W2 along
    # its rows, and partial products accumulate into an f32 scratch.
    k = pl.program_id(1)

    @pl.when(k == 0)
    def _():
        acc_ref[...] = jnp.zeros_like(acc_ref)

    xb = x_ref[...].astype(jnp.bfloat16)
    h = jnp.dot(xb, w1_ref[...], preferred_element_type=jnp.float32)
    h = jnp.maximum(h + b1_ref[...], 0.0)      # exact: bias/ReLU are columnwise
    acc_ref[...] += jnp.dot(h.astype(jnp.bfloat16), w2_ref[...],
                            preferred_element_type=jnp.float32)

    @pl.when(k == pl.num_programs(1) - 1)
    def _():
        o_ref[...] = (acc_ref[...] + b2_ref[...]).astype(o_ref.dtype)


# ------------------------------- wrapper ------------------------------------

def prepare_ffn_params(w1, b1, w2, b2):
    """Pad to lane-dense shapes and cast the weights to bf16 ONCE.

    Hoisted out of the per-call path so each forward does not re-read and
    re-write the weight matrices in HBM (that traffic dominates small-M /
    decode-style calls).

    w1: (d_model, hidden), b1: (hidden,)   # stored (in, out) == PyTorch W.T
    w2: (hidden, d_out),   b2: (d_out,)    # spec module: d_out == hidden
    """
    d_model, hidden = w1.shape
    d_out = w2.shape[1]
    dmp, hp, dop = _pad_lane(d_model), _pad_lane(hidden), _pad_lane(d_out)
    w1p = jnp.pad(w1, ((0, dmp - d_model), (0, hp - hidden))).astype(jnp.bfloat16)
    w2p = jnp.pad(w2, ((0, hp - hidden), (0, dop - d_out))).astype(jnp.bfloat16)
    b1p = jnp.pad(b1, (0, hp - hidden)).reshape(1, hp).astype(jnp.float32)
    b2p = jnp.pad(b2, (0, dop - d_out)).reshape(1, dop).astype(jnp.float32)
    return {"w1": w1p, "b1": b1p, "w2": w2p, "b2": b2p,
            "d_model": int(d_model), "hidden": int(hidden), "d_out": int(d_out)}


def positionwise_feed_forward(x, params, *, tm=512, out_dtype=None):
    """y = linear2(relu(linear1(x))); dropout(p=0) == identity.

    x:      (batch, seq, d_model)
    params: output of prepare_ffn_params (padded bf16 weights / f32 biases).
    out_dtype: pass jnp.bfloat16 if the consumer accepts it (halves writeback).
    """
    w1p, b1p, w2p, b2p = params["w1"], params["b1"], params["w2"], params["b2"]
    d_model, d_out = params["d_model"], params["d_out"]
    dmp, hp = w1p.shape
    dop = w2p.shape[1]

    B, S, _ = x.shape
    assert x.shape[-1] == d_model
    M = B * S
    if out_dtype is None:
        out_dtype = x.dtype
    xb_sz = jnp.dtype(x.dtype).itemsize
    ob_sz = jnp.dtype(out_dtype).itemsize

    cap = _vmem_capacity_bytes()
    budget = int(cap * 0.8)  # leave headroom below the physical / per-TC limit

    # Resident parameter footprint (single-buffered: constant index_map).
    resident = (w1p.size + w2p.size) * 2 + (b1p.size + b2p.size) * 4

    def need_resident(tm_):
        return (2 * tm_ * dmp * xb_sz      # double-buffered x tiles
                + 2 * tm_ * dop * ob_sz    # double-buffered out tiles
                + resident                 # single-buffered weights/biases
                + tm_ * hp * 6             # f32 + bf16 intermediate h temps
                + tm_ * dop * 4)           # f32 y before the output cast

    def need_htiled(tm_, th_):
        return (2 * tm_ * dmp * xb_sz + 2 * tm_ * dop * ob_sz
                + 2 * (dmp * th_ + th_ * dop) * 2       # W1/W2 blocks (bf16, 2-deep)
                + 2 * th_ * 4 + b2p.size * 4            # bias blocks
                + tm_ * dop * 4                         # f32 accumulator scratch
                + tm_ * th_ * 6 + tm_ * dop * 4)        # h / partial-dot temps

    # ---- tile selection ----------------------------------------------------
    tm = min(tm, _round_up(M, 16))          # shrink for tiny M (16 = bf16 pack)
    use_htiled = need_resident(min(tm, 128)) > budget

    th = None
    if not use_htiled:
        while tm > 128 and need_resident(tm) > budget:
            tm = _round_up(tm // 2, 8)
    else:
        th = 128
        for cand in (2048, 1024, 512, 256):
            if hp % cand == 0 and need_htiled(tm, cand) <= budget:
                th = cand
                break
        while tm > 128 and need_htiled(tm, th) > budget:
            tm = _round_up(tm // 2, 8)

    # v7x has 2 TensorCores sharing the "parallel" M axis: make sure there are
    # at least 2 grid steps so both get work.
    if _round_up(M, tm) // tm < 2 and tm > 8:
        tm = _round_up(tm // 2, 8)
    Mp = _round_up(M, tm)

    x2d = x.reshape(M, d_model)
    if Mp != M or dmp != d_model:
        x2d = jnp.pad(x2d, ((0, Mp - M), (0, dmp - d_model)))

    cost = pl.CostEstimate(
        flops=2 * Mp * (dmp * hp + hp * dop),
        transcendentals=0,
        bytes_accessed=int(Mp * dmp * xb_sz + resident + Mp * dop * ob_sz),
    )

    if not use_htiled:
        vmem_need = need_resident(tm)
        compiler_params = pltpu.CompilerParams(
            dimension_semantics=("parallel",),
            # Always set (v5e's default scoped limit is only 16 MiB); cap with
            # headroom below the physical per-TC VMEM.
            vmem_limit_bytes=min(max(int(vmem_need * 5 // 4), 32 << 20),
                                 int(cap * 0.85)),
        )
        out2d = pl.pallas_call(
            ffn_kernel,
            out_shape=jax.ShapeDtypeStruct((Mp, dop), out_dtype),
            grid=(Mp // tm,),
            in_specs=[
                pl.BlockSpec((tm, dmp), lambda i: (i, 0)),          # x (pipelined)
                # Constant-index parameters: single-buffered (Buffered(1)) --
                # 2-deep buffering buys no overlap and doubles their VMEM.
                pl.BlockSpec((dmp, hp), lambda i: (0, 0),
                             pipeline_mode=pl.Buffered(1)),          # W1
                pl.BlockSpec((1, hp), lambda i: (0, 0),
                             pipeline_mode=pl.Buffered(1)),          # b1
                pl.BlockSpec((hp, dop), lambda i: (0, 0),
                             pipeline_mode=pl.Buffered(1)),          # W2
                pl.BlockSpec((1, dop), lambda i: (0, 0),
                             pipeline_mode=pl.Buffered(1)),          # b2
            ],
            out_specs=pl.BlockSpec((tm, dop), lambda i: (i, 0)),
            compiler_params=compiler_params,
            cost_estimate=cost,
        )(x2d, w1p, b1p, w2p, b2p)
    else:
        vmem_need = need_htiled(tm, th)
        compiler_params = pltpu.CompilerParams(
            dimension_semantics=("parallel", "arbitrary"),
            vmem_limit_bytes=min(max(int(vmem_need * 5 // 4), 32 << 20),
                                 int(cap * 0.85)),
        )
        out2d = pl.pallas_call(
            ffn_kernel_htiled,
            out_shape=jax.ShapeDtypeStruct((Mp, dop), out_dtype),
            grid=(Mp // tm, hp // th),
            in_specs=[
                pl.BlockSpec((tm, dmp), lambda i, k: (i, 0)),        # x
                pl.BlockSpec((dmp, th), lambda i, k: (0, k)),        # W1 col-block
                pl.BlockSpec((1, th), lambda i, k: (0, k)),          # b1 block
                pl.BlockSpec((th, dop), lambda i, k: (k, 0)),        # W2 row-block
                pl.BlockSpec((1, dop), lambda i, k: (0, 0),
                             pipeline_mode=pl.Buffered(1)),          # b2
            ],
            out_specs=pl.BlockSpec((tm, dop), lambda i, k: (i, 0)),
            scratch_shapes=[pltpu.VMEM((tm, dop), jnp.float32)],
            compiler_params=compiler_params,
            cost_estimate=cost,
        )(x2d, w1p, b1p, w2p, b2p)

    return out2d[:M, :d_out].reshape(B, S, d_out)


def init_params(key, d_model, hidden):
    """Deterministic init mimicking nn.Linear's U(-1/sqrt(fan_in), 1/sqrt(fan_in))."""
    k1, k2, k3, k4 = jax.random.split(key, 4)
    lim1 = 1.0 / (d_model ** 0.5)
    lim2 = 1.0 / (hidden ** 0.5)
    w1 = jax.random.uniform(k1, (d_model, hidden), jnp.float32, -lim1, lim1)
    b1 = jax.random.uniform(k2, (hidden,), jnp.float32, -lim1, lim1)
    w2 = jax.random.uniform(k3, (hidden, hidden), jnp.float32, -lim2, lim2)
    b2 = jax.random.uniform(k4, (hidden,), jnp.float32, -lim2, lim2)
    return w1, b1, w2, b2


if __name__ == "__main__":
    batch, seq, d_model, hidden = 2, 8, 32, 32

    key = jax.random.PRNGKey(0)
    kx, kp = jax.random.split(key)
    x = jax.random.normal(kx, (batch, seq, d_model), jnp.float32)
    w1, b1, w2, b2 = init_params(kp, d_model, hidden)

    params = prepare_ffn_params(w1, b1, w2, b2)   # one-time pad + bf16 cast
    out = positionwise_feed_forward(x, params)
    out = jax.block_until_ready(out)

    # Reference in plain JAX/f32 (same math as the PyTorch forward).
    ref = jnp.maximum(x.reshape(-1, d_model) @ w1 + b1, 0.0) @ w2 + b2
    ref = ref.reshape(batch, seq, hidden)
    assert out.shape == ref.shape
    # bf16 MXU operands with f32 accumulation -> bf16-level tolerance.
    assert jnp.allclose(out, ref, atol=2e-2, rtol=2e-2), \
        float(jnp.max(jnp.abs(out - ref)))

    print("KERNEL_OK")
</pallas_src>

<mosaic_0001>
module attributes {stable_mosaic.version = 11 : i64} {
  func.func @ffn_kernel(%arg0: i32, %arg1: memref<8x128xf32, #tpu.memory_space<vmem>>, %arg2: memref<128x128xbf16, #tpu.memory_space<vmem>>, %arg3: memref<1x128xf32, #tpu.memory_space<vmem>>, %arg4: memref<128x128xbf16, #tpu.memory_space<vmem>>, %arg5: memref<1x128xf32, #tpu.memory_space<vmem>>, %arg6: memref<8x128xf32, #tpu.memory_space<vmem>>) attributes {dimension_semantics = [#tpu.dimension_semantics<parallel>], iteration_bounds = array<i64: 2>, scalar_prefetch = 0 : i64, scratch_operands = 0 : i64, tpu.core_type = #tpu.core_type<tc>, window_params = [{transform_indices = @transform_0, window_bounds = array<i64: 8, 128>}, {pipeline_mode = #tpu.pipeline_mode<synchronous>, transform_indices = @transform_1, window_bounds = array<i64: 128, 128>}, {pipeline_mode = #tpu.pipeline_mode<synchronous>, transform_indices = @transform_2, window_bounds = array<i64: 1, 128>}, {pipeline_mode = #tpu.pipeline_mode<synchronous>, transform_indices = @transform_3, window_bounds = array<i64: 128, 128>}, {pipeline_mode = #tpu.pipeline_mode<synchronous>, transform_indices = @transform_4, window_bounds = array<i64: 1, 128>}, {transform_indices = @transform_5, window_bounds = array<i64: 8, 128>}]} {
    %c0 = arith.constant 0 : index
    %c0_0 = arith.constant 0 : index
    %0 = vector.load %arg1[%c0, %c0_0] : memref<8x128xf32, #tpu.memory_space<vmem>>, vector<8x128xf32>
    %1 = arith.truncf %0 : vector<8x128xf32> to vector<8x128xbf16>
    %c0_1 = arith.constant 0 : index
    %c0_2 = arith.constant 0 : index
    %2 = vector.load %arg2[%c0_1, %c0_2] : memref<128x128xbf16, #tpu.memory_space<vmem>>, vector<128x128xbf16>
    %cst = arith.constant dense<0.000000e+00> : vector<8x128xf32>
    %3 = tpu.matmul %1, %2, %cst {dimension_numbers = #tpu.dot_dimension_numbers<[1], [0], [0], [1], [0, 0, 1, 1], [], []>} : vector<8x128xbf16>, vector<128x128xbf16>, vector<8x128xf32> -> vector<8x128xf32>
    %c0_3 = arith.constant 0 : index
    %c0_4 = arith.constant 0 : index
    %4 = vector.load %arg3[%c0_3, %c0_4] : memref<1x128xf32, #tpu.memory_space<vmem>>, vector<1x128xf32>
    %5 = vector.broadcast %4 : vector<1x128xf32> to vector<8x128xf32>
    %6 = arith.addf %3, %5 : vector<8x128xf32>
    %cst_5 = arith.constant 0.000000e+00 : f32
    %7 = vector.broadcast %cst_5 : f32 to vector<8x128xf32>
    %8 = arith.maximumf %6, %7 : vector<8x128xf32>
    %9 = arith.truncf %8 : vector<8x128xf32> to vector<8x128xbf16>
    %c0_6 = arith.constant 0 : index
    %c0_7 = arith.constant 0 : index
    %10 = vector.load %arg4[%c0_6, %c0_7] : memref<128x128xbf16, #tpu.memory_space<vmem>>, vector<128x128xbf16>
    %cst_8 = arith.constant dense<0.000000e+00> : vector<8x128xf32>
    %11 = tpu.matmul %9, %10, %cst_8 {dimension_numbers = #tpu.dot_dimension_numbers<[1], [0], [0], [1], [0, 0, 1, 1], [], []>} : vector<8x128xbf16>, vector<128x128xbf16>, vector<8x128xf32> -> vector<8x128xf32>
    %c0_9 = arith.constant 0 : index
    %c0_10 = arith.constant 0 : index
    %12 = vector.load %arg5[%c0_9, %c0_10] : memref<1x128xf32, #tpu.memory_space<vmem>>, vector<1x128xf32>
    %13 = vector.broadcast %12 : vector<1x128xf32> to vector<8x128xf32>
    %14 = arith.addf %11, %13 : vector<8x128xf32>
    %c0_11 = arith.constant 0 : index
    %c0_12 = arith.constant 0 : index
    %15 = vector.load %arg6[%c0_11, %c0_12] : memref<8x128xf32, #tpu.memory_space<vmem>>, vector<8x128xf32>
    tpu.vector_store %arg6[%c0_11, %c0_12], %14 {strides = array<i32>} : memref<8x128xf32, #tpu.memory_space<vmem>>, vector<8x128xf32>,
    return
  }
  func.func @transform_0(%arg0: i32) -> (i32, i32) {
    %c0_i32 = arith.constant 0 : i32
    %c0_i32_0 = arith.constant 0 : i32
    return %arg0, %c0_i32 : i32, i32
  }
  func.func @transform_1(%arg0: i32) -> (i32, i32) {
    %c0_i32 = arith.constant 0 : i32
    %c0_i32_0 = arith.constant 0 : i32
    %c0_i32_1 = arith.constant 0 : i32
    return %c0_i32, %c0_i32_0 : i32, i32
  }
  func.func @transform_2(%arg0: i32) -> (i32, i32) {
    %c0_i32 = arith.constant 0 : i32
    %c0_i32_0 = arith.constant 0 : i32
    %c0_i32_1 = arith.constant 0 : i32
    return %c0_i32, %c0_i32_0 : i32, i32
  }
  func.func @transform_3(%arg0: i32) -> (i32, i32) {
    %c0_i32 = arith.constant 0 : i32
    %c0_i32_0 = arith.constant 0 : i32
    %c0_i32_1 = arith.constant 0 : i32
    return %c0_i32, %c0_i32_0 : i32, i32
  }
  func.func @transform_4(%arg0: i32) -> (i32, i32) {
    %c0_i32 = arith.constant 0 : i32
    %c0_i32_0 = arith.constant 0 : i32
    %c0_i32_1 = arith.constant 0 : i32
    return %c0_i32, %c0_i32_0 : i32, i32
  }
  func.func @transform_5(%arg0: i32) -> (i32, i32) {
    %c0_i32 = arith.constant 0 : i32
    %c0_i32_0 = arith.constant 0 : i32
    return %arg0, %c0_i32 : i32, i32
  }
}

</mosaic_0001>

<bundles_post_ra>
// kernel: tpu_custom_call.1
= control target key start
LH: loop header
LB: loop body
LE: loop exit
PB: predicated region body
PF: predicated region fallthrough
CT: control target
= control target key end

     0   :  { %10 = vsyncpa [#allocation3], 0  ;;  %s1157_s0 = inlined_call_operand.hbm [shape: f32[16,128], index: 0, kind: input, shape index: {}]   ;;  %s1158_s1 = inlined_call_operand.hbm [shape: bf16[128,128], index: 1, kind: input, shape index: {}]   ;;  %s1159_s2 = inlined_call_operand.vmem [shape: f32[1,128], index: 2, kind: input, shape index: {}]   ;;  %s1160_s3 = inlined_call_operand.hbm [shape: bf16[128,128], index: 3, kind: input, shape index: {}]   ;;  %s1161_s4 = inlined_call_operand.vmem [shape: f32[1,128], index: 4, kind: input, shape index: {}]   ;;  %s1162_s5 = inlined_call_operand.hbm [shape: f32[16,128], index: 5, kind: output, shape index: {}]  }
   0x1   :  { %12 = vsyncpa [#allocation3 + $0x1], 0 }
   0x2   :  { %13 = vsyncpa [#allocation6], 0 }
   0x3   :  { %14 = vsyncpa [#allocation4], 0 }
   0x4   :  { %16 = vsyncpa [#allocation4 + $0x1], 0  ;;  %s967_s18 = smov 0   ;;  %s969_s19 = smov 0  }
   0x5   :  { %s971_s20 = smov 0   ;;  %s973_s21 = smov 0  }
   0x6 LB: > { %s988_s22 = sadd.s32 4294967295, %s927_s21   ;;  %s600_s23 = sadd.s32 4294967294, %s927_s21   ;;  %s927_s21 = sphi %s973_s21, %s1184_s21   ;;  %s923_s20 = sphi %s971_s20, %s1183_s20   ;;  %s919_s19 = sphi %s969_s19, %s1182_s19   ;;  %s915_s18 = sphi %s967_s18, %s1181_s18  }
   0x7   : > { %p42_p0 = scmp.ne.s32.totalorder %s919_s19, %s915_s18  ;;  %p1163_p1 = scmp.eq.s32.totalorder %s988_s22, 0 }
   0x8   : > { %p156_p3 = scmp.eq.s32.totalorder %s600_s23, 1  ;;  %p601_p5 = scmp.ge.s32.totalorder %s927_s21, 1 }
   0x9   : > { %p997_p4 = por %p1163_p1, %p42_p0  ;;  %p163_p7 = scmp.lt.s32.totalorder %s927_s21, 3 }
   0xa   : > { %p1002_p6 = por %p156_p3, %p42_p0  ;;  %s929_s27 = smov [#allocation5]  }
   0xb   : > { %s1167_s24 = scalar_select %p997_p4, 1, 0 }
   0xc   : > { %s1168_s25 = scalar_select %p1002_p6, 1, 0 }
   0xd   : > { %p1007_p8 = pnand %p601_p5, %p163_p7  ;;  %s175_s28 = sshll.u32 %s929_s27, 4  ;;  %s176_s28 = int_to_ptr.vmem [resolvable:$true] %s175_s28 }
   0xe   : > { %s930_s30 = smov [#allocation7]   ;;  %s790_s7 = scalar_lea.vmem %s176_s28, 1024 }
   0xf   : > { %s1169_s26 = scalar_select %p1007_p8, 1, 0 }
  0x10   : > { %p704_p9 = pneg %p1007_p8  ;;  %s191_s6 = sshll.u32 %s930_s30, 4  ;;  %s192_s6 = int_to_ptr.vmem [resolvable:$true] %s191_s6 }
  0x11   : > { %p791_p13 = scmp.ne.s32.totalorder %s176_s28, %s790_s7  ;;  %p798_p5 = scmp.lt.s32.totalorder %s176_s28, %s176_s28 }
  0x12   : > { %p1016_p11 = pnand %p704_p9, %p1163_p1  ;;  %p799_p7 = scmp.lt.s32.totalorder %s790_s7, %s790_s7 }
  0x14   : > { %p781_p12 = pneg %p1016_p11  ;;  %p800_p10 = por %p799_p7, %p798_p5 }
  0x16   : > { %p793_p0 = pnand %p791_p13, %p781_p12 }
  0x18   : > { %p794_p3 = pneg %p793_p0 }
  0x1a   : > { %p801_p9 = pnand %p800_p10, %p794_p3 }
  0x1c   : > { %804 = shalt.err (!%p801_p9)
}
  0x1d   : > { %s931_s8 = smov 64   ;;  %s932_s9 = smov 4  }
  0x1e   : > { %707 = dma.hbm_to_vmem [thread:$0]  (!%p1016_p11), %s1158_s1, 1024, %s176_s28, [#allocation6], %s931_s8, %s931_s8, %s932_s9  }
  0x1f   : > { %s816_s12 = scalar_lea.vmem %s192_s6, 1024  ;;  %p824_p2 = scmp.lt.s32.totalorder %s192_s6, %s192_s6 }
  0x20   : > { %p817_p1 = scmp.ne.s32.totalorder %s192_s6, %s816_s12  ;;  %p825_p6 = scmp.lt.s32.totalorder %s816_s12, %s816_s12 }
  0x22   : > { %p819_p13 = pnand %p817_p1, %p781_p12  ;;  %p826_p5 = por %p825_p6, %p824_p2 }
  0x24   : > { %p820_p0 = pneg %p819_p13 }
  0x26   : > { %p827_p10 = pnand %p826_p5, %p820_p0 }
  0x28   : > { %830 = shalt.err (!%p827_p10)
}
  0x29   : > { %710 = dma.hbm_to_vmem [thread:$0]  (!%p1016_p11), %s1160_s3, 1024, %s192_s6, [#allocation6], %s931_s8, %s931_s8, %s932_s9  }
  0x2a   : > { %s1039_s15 = sadd.s32 1, %s927_s21   ;;  %s29_s16 = sadd.s32 1, %s923_s20 }
  0x2b   : > { %s26_s17 = ssub.s32 %s927_s21, %s1039_s15  ;;  %p36_p1 = scmp.ne.s32.totalorder %s923_s20, %s919_s19 }
  0x2c   : > { %p27_p2 = scmp.eq.s32.totalorder %s26_s17, 0  ;;  %p37_p6 = scmp.eq.s32.totalorder %s927_s21, 0 }
  0x2d   : > { %p1171_p12 = scmp.eq.s32.totalorder %s988_s22, 1  ;;  %p721_p7 = scmp.lt.s32.totalorder %s927_s21, 2 }
  0x2e   : > { %s1055_s27 = scalar_select %p27_p2, %s923_s20, %s29_s16  }
  0x2f   : > { %p1049_p3 = por %p1171_p12, %p36_p1  ;;  %p38_p9 = por %p37_p6, %p36_p1 }
  0x30   : > { %s208_s28 = sand.u32 1, %s923_s20   ;;  %s606_s30 = sshll.u32 %s927_s21, 7 }
  0x31   : > { %s1172_s23 = scalar_select %p1049_p3, 1, 0 }
  0x32   : > { %s605_s29 = sshll.u32 %s208_s28, 3  ;;  %s1062_s8 = scalar_lea.hbm %s1157_s0, %s606_s30 }
  0x33   : > { %s212_s9 = scalar_lea.vmem [#allocation2], %s605_s29  ;;  %p1064_p11 = pnand %p721_p7, %p38_p9 }
  0x34   : > { %s219_s10 = sshll.u32 %s212_s9, 4  ;;  %s209_s12 = scalar_lea.sflag [#allocation3], %s208_s28  ;;  %s220_s10 = int_to_ptr.vmem [resolvable:$true] %s219_s10 }
  0x35   : > { %s831_s13 = scalar_lea.hbm %s1062_s8, 128  ;;  %p833_p0 = pneg %p1064_p11 }
  0x36   : > { %p832_p13 = scmp.ne.s32.totalorder %s1062_s8, %s831_s13  ;;  %s836_s17 = scalar_lea.hbm %s1157_s0, 256 }
  0x37   : > { %p837_p1 = scmp.lt.s32.totalorder %s1062_s8, %s1157_s0  ;;  %p838_p2 = scmp.lt.s32.totalorder %s836_s17, %s831_s13 }
  0x38   : > { %p834_p5 = pnand %p833_p0, %p832_p13 }
  0x39   : > { %p839_p6 = por %p838_p2, %p837_p1 }
  0x3a   : > { %p835_p10 = pneg %p834_p5 }
  0x3c   : > { %p840_p12 = pnand %p839_p6, %p835_p10 }
  0x3e   : > { %843 = shalt.err (!%p840_p12)
}
  0x3f   : > { %s844_s6 = scalar_lea.vmem %s220_s10, 128  ;;  %s933_s28 = smov [#allocation2]  }
  0x40   : > { %p845_p7 = scmp.ne.s32.totalorder %s220_s10, %s844_s6  ;;  %s849_s7 = sshll.u32 %s933_s28, 4  ;;  %s850_s7 = int_to_ptr.vmem [resolvable:$false] %s849_s7 }
  0x41   : > { %s851_s9 = scalar_lea.vmem %s850_s7, 256  ;;  %p852_p13 = scmp.lt.s32.totalorder %s220_s10, %s850_s7 }
  0x42   : > { %p847_p9 = pnand %p845_p7, %p833_p0  ;;  %p853_p5 = scmp.lt.s32.totalorder %s851_s9, %s844_s6 }
  0x44   : > { %p848_p3 = pneg %p847_p9  ;;  %p854_p4 = por %p853_p5, %p852_p13 }
  0x46   : > { %p855_p8 = pnand %p854_p4, %p848_p3 }
  0x48   : > { %858 = shalt.err (!%p855_p8)
}
  0x49   : > { %714 = dma.hbm_to_vmem [thread:$0]  (!%p1064_p11), %s1062_s8, 128, %s220_s10, %s209_s12  }
  0x4a   : > { %p1174_p10 = scmp.ne.s32.totalorder %s1169_s26, 0 }
  0x4b   : > { %s1085_s13 = sand.u32 (!%p1174_p10), 1, %s919_s19   ;;  %p1175_p4 = scmp.ne.s32.totalorder (!%p1174_p10), %s1167_s24, 0 }
  0x4c   : > { %228 = sbr.rel (%p1174_p10) target bundleno = 527 (0x20f), region = 40  ;;  %s608_s14 = sshll.u32 (!%p1174_p10), %s1085_s13, 3 }
  0x4d   : > { %s231_s16 = scalar_lea.sflag (!%p1174_p10), [#allocation3], %s1085_s13  ;;  %s1091_s17 = scalar_lea.vmem (!%p1174_p10), [#allocation2], %s608_s14 }
  0x51   : > { %902 = dma.done.wait (%p1175_p4), %s231_s16, 128  }
  0x52   : > { %904 = vsyncadd (%p1175_p4), %s231_s16, 4294967168  ;;  %p1176_p8 = scmp.eq.s32.totalorder %s988_s22, 0 }
  0x54   : > { %906 = dma.done.wait (%p1176_p8), [#allocation6], 2048   ;;  %p1177_p3 = pmov %p1176_p8 }
  0x55   : > { %v934_v0 = vmov 0.0   ;;  %vm935_vm0 = vmmov 0   ;;  %v763_v1 = vld [vmem:[#allocation5 + $0x38] sm:$0xff]   ;;  %v764_v2 = vld [vmem:[#allocation5 + $0x30] sm:$0xff]   ;;  %v765_v3 = vld [vmem:[#allocation5 + $0x28] sm:$0xff]   ;;  %s631_s11 = sshll.u32 %s988_s22, 7 }
  0x56   : > { %908 = vsyncadd (%p1177_p3), [#allocation6], 4294965248  ;;  %652 = vmatprep.subr.bf16.mxu0 %v934_v0  ;;  %668 = vmatprep.mubr.msk.bf16.mxu0 %vm935_vm0, %v934_v0  ;;  %v771_v4 = vld [vmem:[#allocation7 + $0x38] sm:$0xff]   ;;  %v766_v5 = vld [vmem:[#allocation5 + $0x20] sm:$0xff]   ;;  %s268_s12 = scalar_lea.vmem [#allocation8], %s608_s14  ;;  %s1114_s28 = scalar_lea.hbm %s1162_s5, %s631_s11 }
  0x57   : > { %672 = vmatprep.subr.bf16.mxu1 %v934_v0  ;;  %688 = vmatprep.mubr.msk.bf16.mxu1 %vm935_vm0, %v934_v0  ;;  %v772_v6 = vld [vmem:[#allocation7 + $0x30] sm:$0xff]   ;;  %v767_v7 = vld [vmem:[#allocation5 + $0x18] sm:$0xff]   ;;  %v773_v8 = vld [vmem:[#allocation7 + $0x28] sm:$0xff]   ;;  %s511_s30 = sshll.u32 %s268_s12, 4  ;;  %s498_s7 = scalar_lea.sflag [#allocation4], %s1085_s13  ;;  %s1116_s30 = int_to_ptr.vmem [resolvable:$true] %s511_s30 }
  0x58   : > { %653 = vmatpush3.bf16.msra.mxu0 %v763_v1  ;;  %673 = vmatpush3.bf16.msra.mxu1 %v771_v4  ;;  %v768_v9 = vld [vmem:[#allocation5 + $0x10] sm:$0xff]   ;;  %v774_v10 = vld [vmem:[#allocation7 + $0x20] sm:$0xff]   ;;  %v769_v11 = vld [vmem:[#allocation5 + $0x8] sm:$0xff]   ;;  %s859_s22 = scalar_lea.vmem %s1116_s30, 128  ;;  %p1178_p0 = scmp.ne.s32.totalorder %s1172_s23, 0 }
  0x59   : > { %654 = vmatprep.subr.bf16.mxu0 %v934_v0  ;;  %674 = vmatprep.subr.bf16.mxu1 %v934_v0  ;;  %v775_v12 = vld [vmem:[#allocation7 + $0x18] sm:$0xff]   ;;  %v770_v13 = vld [vmem:[#allocation5] sm:$0xff]   ;;  %v776_v15 = vld [vmem:[#allocation7 + $0x10] sm:$0xff]   ;;  %p860_p11 = scmp.ne.s32.totalorder %s1116_s30, %s859_s22  ;;  %s936_s9 = smov [#allocation8]  }
  0x5a   : > { %v270_v14 = vld [vmem:[%s1091_s17] sm:$0xff]  ;;  %v777_v17 = vld [vmem:[#allocation7 + $0x8] sm:$0xff]   ;;  %v778_v18 = vld [vmem:[#allocation7] sm:$0xff]   ;;  %s863_s14 = sshll.u32 %s936_s9, 4  ;;  %s864_s14 = int_to_ptr.vmem [resolvable:$false] %s863_s14 }
  0x5b   : > { %v271_v16 = vpack.c.bf16 %v270_v14, %v270_v14  ;;  %v612_v19 = vld [vmem:[%s1159_s2] ss:$0 sm:$0xff]  ;;  %p861_p1 = pnand %p860_p11, %p1178_p0  ;;  %s865_s16 = scalar_lea.vmem %s864_s14, 256 }
  0x5c   : > { %655 = vmatpush3.bf16.msra.mxu0 %v764_v2  ;;  %675 = vmatpush3.bf16.msra.mxu1 %v772_v6  ;;  %v621_v27 = vld [vmem:[%s1161_s4] ss:$0 sm:$0xff]  ;;  %p866_p6 = scmp.lt.s32.totalorder %s1116_s30, %s864_s14  ;;  %p867_p12 = scmp.lt.s32.totalorder %s865_s16, %s859_s22 }
  0x5d   : > { %656 = vmatprep.subr.bf16.mxu0 %v934_v0  ;;  %676 = vmatprep.subr.bf16.mxu1 %v934_v0  ;;  %p862_p2 = pneg %p861_p1 }
  0x5e   : > { %p868_p7 = por %p867_p12, %p866_p6 }
  0x60   : > { %657 = vmatpush3.bf16.msra.mxu0 %v765_v3  ;;  %677 = vmatpush3.bf16.msra.mxu1 %v773_v8  ;;  %p869_p9 = pnand %p868_p7, %p862_p2 }
  0x61   : > { %658 = vmatprep.subr.bf16.mxu0 %v934_v0  ;;  %678 = vmatprep.subr.bf16.mxu1 %v934_v0 }
  0x64   : > { %659 = vmatpush3.bf16.msra.mxu0 %v766_v5  ;;  %679 = vmatpush3.bf16.msra.mxu1 %v774_v10 }
  0x65   : > { %660 = vmatprep.subr.bf16.mxu0 %v934_v0  ;;  %680 = vmatprep.subr.bf16.mxu1 %v934_v0 }
  0x68   : > { %661 = vmatpush3.bf16.msra.mxu0 %v767_v7  ;;  %681 = vmatpush3.bf16.msra.mxu1 %v775_v12 }
  0x69   : > { %662 = vmatprep.subr.bf16.mxu0 %v934_v0  ;;  %682 = vmatprep.subr.bf16.mxu1 %v934_v0 }
  0x6c   : > { %663 = vmatpush3.bf16.msra.mxu0 %v768_v9  ;;  %683 = vmatpush3.bf16.msra.mxu1 %v776_v15 }
  0x6d   : > { %664 = vmatprep.subr.bf16.mxu0 %v934_v0  ;;  %684 = vmatprep.subr.bf16.mxu1 %v934_v0 }
  0x70   : > { %665 = vmatpush3.bf16.msra.mxu0 %v769_v11  ;;  %685 = vmatpush3.bf16.msra.mxu1 %v777_v17 }
  0x71   : > { %666 = vmatprep.subr.bf16.mxu0 %v934_v0  ;;  %686 = vmatprep.subr.bf16.mxu1 %v934_v0 }
  0x74   : > { %667 = vmatpush3.bf16.msra.mxu0 %v770_v13  ;;  %687 = vmatpush3.bf16.msra.mxu1 %v778_v18 }
  0x77   : > { %669 = vmatmul.mubr.bf16.vlgmr.msra.gmra.mxu0 %v271_v16 }
 0x137   : > { %v377_v20 = vpop.f32.mrf.mxu0 }
 0x138   : > { %v378_v21 = vadd.f32 %v612_v19, %v377_v20 }
 0x139   : > { %v670_v22 = vpop.f32.mrf.mxu0 }
 0x13a   : > { %v383_v23 = vmax.f32 %v378_v21, 0.0 }
 0x13b   : > { %v380_v24 = vpop.f32.mrf.mxu0 }
 0x13c   : > { %v384_v25 = vpack.c.bf16 %v383_v23, %v383_v23 }
 0x13d   : > { %v671_v26 = vpop.f32.mrf.mxu0 }
 0x13e   : > { %689 = vmatmul.mubr.bf16.vlgmr.msra.gmra.mxu1 %v384_v25 }
 0x1fe   : > { %v490_v28 = vpop.f32.mrf.mxu1 }
 0x1ff   : > { %v491_v29 = vadd.f32 %v621_v27, %v490_v28 }
 0x200   : > { %v690_v30 = vpop.f32.mrf.mxu1 }
 0x201   : > { %496 = vst [vmem:[%s268_s12] sm:$0xff] %v491_v29 }
 0x202   : > { %v493_v31 = vpop.f32.mrf.mxu1 }
 0x203   : > { %872 = shalt.err (!%p869_p9)
}
 0x204   : > { %s873_s17 = scalar_lea.hbm %s1114_s28, 128  ;;  %s877_s26 = scalar_lea.hbm %s1162_s5, 256 }
 0x205   : > { %p874_p13 = scmp.ne.s32.totalorder %s1114_s28, %s873_s17  ;;  %p878_p4 = scmp.lt.s32.totalorder %s1114_s28, %s1162_s5 }
 0x206   : > { %p879_p8 = scmp.lt.s32.totalorder %s877_s26, %s873_s17 }
 0x207   : > { %p875_p5 = pnand %p874_p13, %p1178_p0 }
 0x208   : > { %p880_p3 = por %p879_p8, %p878_p4 }
 0x209   : > { %p876_p10 = pneg %p875_p5 }
 0x20b   : > { %p881_p11 = pnand %p880_p3, %p876_p10 }
 0x20d   : > { %884 = shalt.err (!%p881_p11)
}
 0x20e   : > { %702 = dma.vmem_to_hbm [thread:$0]  (%p1178_p0), %s1116_s30, 128, %s1114_s28, %s498_s7   ;;  %v691_v32 = vpop.f32.mrf.mxu1 }
 0x20f PF: > { %s523_s11 = sand.u32 1, %s915_s18   ;;  %p1179_p1 = scmp.ne.s32.totalorder %s1168_s25, 0 }
 0x210   : > { %p1180_p2 = scmp.ge.s32.totalorder %s927_s21, 2  ;;  %s524_s12 = scalar_lea.sflag [#allocation4], %s523_s11 }
 0x212   : > { %p716_p6 = pnand %p1180_p2, %p1179_p1 }
 0x214   : > { %p717_p12 = pneg %p716_p6 }
 0x216   : > { %910 = dma.done.wait (%p717_p12), %s524_s12, 128  }
 0x217   : > { %912 = vsyncadd (%p717_p12), %s524_s12, 4294967168  ;;  %p19_p7 = scmp.ge.s32.totalorder %s1039_s15, 4   ;;  %s1181_s18 = smov %s919_s19 }
 0x218   : > { %s1182_s19 = smov %s923_s20  ;;  %s1183_s20 = smov %s1055_s27 }
 0x219   : > { %s1184_s21 = smov %s1039_s15  ;;  %21 = sbr.rel (!%p19_p7) target bundleno = 6 (0x6), region = 93 }
 0x21e   :  { %529 = vsyncpa [#allocation3], 1 }
 0x21f   :  { %531 = vsyncpa [#allocation3 + $0x1], 1 }
 0x220   :  { %532 = vsyncpa [#allocation6], 1 }
 0x221   :  { %533 = vsyncpa [#allocation4], 1 }
 0x222   :  { %535 = vsyncpa [#allocation4 + $0x1], 1 }

</bundles_post_ra>
